<compile_context>
chip_gen: v6e
topology: v6e:2x2x1
jax: 0.10.0
libtpu: 0.0.40
codegen_flags: <defaults>
</compile_context>

<pallas_src>
import jax
import jax.numpy as jnp
from jax.experimental import pallas as pl
from jax.experimental.pallas import tpu as pltpu

IN_F = 14
H1, H2, H3, OUT = 100, 100, 50, 3
PAD = 128            # lane width; hidden / output feature dims padded to this
NEG_BIG = -1e30      # padded-logit bias value; exp(-1e30) underflows to 0


def mlp_kernel(x_ref,
               w1_ref, b1_ref,
               w2_ref, b2_ref,
               w3_ref, b3_ref,
               w4_ref, b4_ref,
               o_ref):
    x = x_ref[...]                                   # (tb, 14) bf16

    # fc1 + ELU (alpha = 1.0, PyTorch default).  bf16 operands, f32 accumulate.
    h = jnp.dot(x, w1_ref[...], preferred_element_type=jnp.float32) + b1_ref[...]
    h = jnp.where(h > 0, h, jnp.exp(h) - 1.0)

    # fc2 + LeakyReLU (negative_slope = 0.01)
    h = jnp.dot(h.astype(jnp.bfloat16), w2_ref[...],
                preferred_element_type=jnp.float32) + b2_ref[...]
    h = jnp.where(h > 0, h, 0.01 * h)

    # fc3 + sigmoid (EUP tanh path: sigmoid(x) = 0.5*(tanh(x/2)+1))
    h = jnp.dot(h.astype(jnp.bfloat16), w3_ref[...],
                preferred_element_type=jnp.float32) + b3_ref[...]
    h = 0.5 * (jnp.tanh(0.5 * h) + 1.0)

    # fc4 + softmax(dim=1) on the lane-dense 128-wide row.  b4's padded lanes
    # are pre-filled with -1e30, so padded logits arrive already masked and
    # exp() underflows them to exactly 0.  Real logits are bounded (sigmoid
    # outputs in (0,1), |w4|,|b4| <= 1/sqrt(50) -> |logit| <~ 7.3), so no
    # max-subtraction is needed and exp cannot overflow.
    logits = jnp.dot(h.astype(jnp.bfloat16), w4_ref[...],
                     preferred_element_type=jnp.float32) + b4_ref[...]
    e = jnp.exp(logits)
    denom = jnp.sum(e, axis=1, keepdims=True)
    o_ref[...] = (e / denom).astype(o_ref.dtype)     # exact divide: rows sum to 1


def _choose_tb(batch, tb_max=4096):
    """Batch tile: big enough to amortize per-step pipeline overhead (~0.35us),
    capped at ceil(B/2) so the grid has >= 2 steps (v7x megacore) and at tb_max
    so tiles stay well inside scoped VMEM."""
    if batch <= 16:
        return batch                       # one tiny tile; block == full dims
    half = (batch + 1) // 2                # cdiv(B, 2): at least 2 grid steps
    half = ((half + 15) // 16) * 16        # sublane-align (bf16-safe multiple)
    return int(min(tb_max, half))


def net_forward(x, padded_params, *, tb_max=4096):
    """x: (B, 14) float32.  padded_params: lane-padded bf16 weights / f32 biases."""
    B = x.shape[0]
    tb = _choose_tb(B, tb_max)
    grid = (pl.cdiv(B, tb),)

    p = padded_params

    # Weights / biases use block index (0, 0) on every grid step -> resident in
    # VMEM for the whole batch loop; only x / out tiles stream through.
    def resident(a):
        return pl.BlockSpec(a.shape, lambda i: (0, 0))

    out_padded = pl.pallas_call(
        mlp_kernel,
        out_shape=jax.ShapeDtypeStruct((B, PAD), jnp.float32),
        grid=grid,
        in_specs=[
            pl.BlockSpec((tb, IN_F), lambda i: (i, 0)),
            resident(p["w1"]), resident(p["b1"]),
            resident(p["w2"]), resident(p["b2"]),
            resident(p["w3"]), resident(p["b3"]),
            resident(p["w4"]), resident(p["b4"]),
        ],
        # Lane-dense (128-wide) output tile -> unmasked full-vreg stores and a
        # contiguous tile DMA; real probabilities live in lanes [:3].
        out_specs=pl.BlockSpec((tb, PAD), lambda i: (i, 0)),
        compiler_params=pltpu.CompilerParams(
            dimension_semantics=("parallel",),    # megacore on v7x; no-op 1-TC
            vmem_limit_bytes=48 * 1024 * 1024,    # headroom for tb up to 4096
        ),
    )(x.astype(jnp.bfloat16),
      p["w1"], p["b1"], p["w2"], p["b2"],
      p["w3"], p["b3"], p["w4"], p["b4"])

    return out_padded[:, :OUT]


def init_params(key):
    """Logical nn.Linear params, stored transposed: w (in, out), b (1, out)."""
    dims = [(IN_F, H1), (H1, H2), (H2, H3), (H3, OUT)]
    params = {}
    for i, (fan_in, fan_out) in enumerate(dims, start=1):
        key, kw, kb = jax.random.split(key, 3)
        bound = 1.0 / jnp.sqrt(fan_in)
        params[f"w{i}"] = jax.random.uniform(
            kw, (fan_in, fan_out), jnp.float32, -bound, bound)
        params[f"b{i}"] = jax.random.uniform(
            kb, (1, fan_out), jnp.float32, -bound, bound)
    return params


def pad_params(params):
    """Lane-pad every weight/bias to 128 lanes; cast weights to bf16.

    Zero padding keeps the matmul chain exact: padded pre-activations are 0,
    ELU(0)=LeakyReLU(0)=0, and the zero rows of the next weight neutralise the
    sigmoid(0)=0.5 padded lanes.  b4's padded lanes are -1e30 so the fc4 bias
    add doubles as the softmax lane mask (no in-kernel iota/cmp/select).
    Biases stay f32 (added post-accumulation on the VPU).
    """
    def pad2(a, shape, fill=0.0):
        out = jnp.full(shape, fill, a.dtype)
        return out.at[:a.shape[0], :a.shape[1]].set(a)

    bf16 = jnp.bfloat16
    return {
        "w1": pad2(params["w1"], (IN_F, PAD)).astype(bf16),
        "w2": pad2(params["w2"], (PAD, PAD)).astype(bf16),
        "w3": pad2(params["w3"], (PAD, PAD)).astype(bf16),
        "w4": pad2(params["w4"], (PAD, PAD)).astype(bf16),
        "b1": pad2(params["b1"], (1, PAD)),
        "b2": pad2(params["b2"], (1, PAD)),
        "b3": pad2(params["b3"], (1, PAD)),
        "b4": pad2(params["b4"], (1, PAD), fill=NEG_BIG),
    }


def reference_forward(x, params):
    """Pure-JAX f32 reference matching the PyTorch module semantics."""
    h = jnp.dot(x, params["w1"]) + params["b1"]
    h = jnp.where(h > 0, h, jnp.exp(h) - 1.0)          # ELU, alpha=1
    h = jnp.dot(h, params["w2"]) + params["b2"]
    h = jnp.where(h > 0, h, 0.01 * h)                  # LeakyReLU
    h = jax.nn.sigmoid(jnp.dot(h, params["w3"]) + params["b3"])
    logits = jnp.dot(h, params["w4"]) + params["b4"]
    return jax.nn.softmax(logits, axis=1)


if __name__ == "__main__":
    key = jax.random.PRNGKey(0)
    key, kx, kx2 = jax.random.split(key, 3)

    params = init_params(key)
    padded = pad_params(params)

    # Small demo batch: single grid step.
    B = 8
    x = jax.random.normal(kx, (B, IN_F), jnp.float32)
    out = jax.block_until_ready(net_forward(x, padded))
    ref = reference_forward(x, params)
    assert out.shape == (B, OUT)
    # bf16 matmul operands (f32 accumulation) vs. pure-f32 reference -> ~1e-2
    # level relative error budget.
    assert jnp.allclose(out, ref, atol=4e-2, rtol=4e-2), "mismatch vs reference (small batch)"
    assert jnp.allclose(jnp.sum(out, axis=1), 1.0, atol=1e-3), "softmax rows must sum to ~1"

    # Larger batch: exercises the tiled, pipelined, weight-resident path with
    # >= 2 grid steps (both v7x TensorCores active).
    B2 = 2048
    x2 = jax.random.normal(kx2, (B2, IN_F), jnp.float32)
    out2 = jax.block_until_ready(net_forward(x2, padded))
    ref2 = reference_forward(x2, params)
    assert out2.shape == (B2, OUT)
    assert jnp.allclose(out2, ref2, atol=4e-2, rtol=4e-2), "mismatch vs reference (tiled batch)"
    assert jnp.allclose(jnp.sum(out2, axis=1), 1.0, atol=1e-3), "softmax rows must sum to ~1"

    print("KERNEL_OK")
</pallas_src>

<mosaic_0001>
module attributes {stable_mosaic.version = 11 : i64} {
  func.func @mlp_kernel(%arg0: i32, %arg1: memref<8x14xbf16, #tpu.memory_space<vmem>>, %arg2: memref<14x128xbf16, #tpu.memory_space<vmem>>, %arg3: memref<1x128xf32, #tpu.memory_space<vmem>>, %arg4: memref<128x128xbf16, #tpu.memory_space<vmem>>, %arg5: memref<1x128xf32, #tpu.memory_space<vmem>>, %arg6: memref<128x128xbf16, #tpu.memory_space<vmem>>, %arg7: memref<1x128xf32, #tpu.memory_space<vmem>>, %arg8: memref<128x128xbf16, #tpu.memory_space<vmem>>, %arg9: memref<1x128xf32, #tpu.memory_space<vmem>>, %arg10: memref<8x128xf32, #tpu.memory_space<vmem>>) attributes {dimension_semantics = [#tpu.dimension_semantics<parallel>], iteration_bounds = array<i64: 1>, scalar_prefetch = 0 : i64, scratch_operands = 0 : i64, tpu.core_type = #tpu.core_type<tc>, window_params = [{transform_indices = @transform_0, window_bounds = array<i64: 8, 14>}, {pipeline_mode = #tpu.pipeline_mode<synchronous>, transform_indices = @transform_1, window_bounds = array<i64: 14, 128>}, {pipeline_mode = #tpu.pipeline_mode<synchronous>, transform_indices = @transform_2, window_bounds = array<i64: 1, 128>}, {pipeline_mode = #tpu.pipeline_mode<synchronous>, transform_indices = @transform_3, window_bounds = array<i64: 128, 128>}, {pipeline_mode = #tpu.pipeline_mode<synchronous>, transform_indices = @transform_4, window_bounds = array<i64: 1, 128>}, {pipeline_mode = #tpu.pipeline_mode<synchronous>, transform_indices = @transform_5, window_bounds = array<i64: 128, 128>}, {pipeline_mode = #tpu.pipeline_mode<synchronous>, transform_indices = @transform_6, window_bounds = array<i64: 1, 128>}, {pipeline_mode = #tpu.pipeline_mode<synchronous>, transform_indices = @transform_7, window_bounds = array<i64: 128, 128>}, {pipeline_mode = #tpu.pipeline_mode<synchronous>, transform_indices = @transform_8, window_bounds = array<i64: 1, 128>}, {transform_indices = @transform_9, window_bounds = array<i64: 8, 128>}]} {
    %c0 = arith.constant 0 : index
    %c0_0 = arith.constant 0 : index
    %0 = vector.load %arg1[%c0, %c0_0] : memref<8x14xbf16, #tpu.memory_space<vmem>>, vector<8x14xbf16>
    %c0_1 = arith.constant 0 : index
    %c0_2 = arith.constant 0 : index
    %1 = vector.load %arg2[%c0_1, %c0_2] : memref<14x128xbf16, #tpu.memory_space<vmem>>, vector<14x128xbf16>
    %cst = arith.constant dense<0.000000e+00> : vector<8x128xf32>
    %2 = tpu.matmul %0, %1, %cst {dimension_numbers = #tpu.dot_dimension_numbers<[1], [0], [0], [1], [0, 0, 1, 1], [], []>} : vector<8x14xbf16>, vector<14x128xbf16>, vector<8x128xf32> -> vector<8x128xf32>
    %c0_3 = arith.constant 0 : index
    %c0_4 = arith.constant 0 : index
    %3 = vector.load %arg3[%c0_3, %c0_4] : memref<1x128xf32, #tpu.memory_space<vmem>>, vector<1x128xf32>
    %4 = vector.broadcast %3 : vector<1x128xf32> to vector<8x128xf32>
    %5 = arith.addf %2, %4 : vector<8x128xf32>
    %cst_5 = arith.constant 0.000000e+00 : f32
    %6 = vector.broadcast %cst_5 : f32 to vector<8x128xf32>
    %7 = arith.cmpf ogt, %5, %6 : vector<8x128xf32>
    %8 = math.exp %5 : vector<8x128xf32>
    %cst_6 = arith.constant 1.000000e+00 : f32
    %9 = vector.broadcast %cst_6 : f32 to vector<8x128xf32>
    %10 = arith.subf %8, %9 : vector<8x128xf32>
    %11 = arith.select %7, %5, %10 : vector<8x128xi1>, vector<8x128xf32>
    %12 = arith.truncf %11 : vector<8x128xf32> to vector<8x128xbf16>
    %c0_7 = arith.constant 0 : index
    %c0_8 = arith.constant 0 : index
    %13 = vector.load %arg4[%c0_7, %c0_8] : memref<128x128xbf16, #tpu.memory_space<vmem>>, vector<128x128xbf16>
    %cst_9 = arith.constant dense<0.000000e+00> : vector<8x128xf32>
    %14 = tpu.matmul %12, %13, %cst_9 {dimension_numbers = #tpu.dot_dimension_numbers<[1], [0], [0], [1], [0, 0, 1, 1], [], []>} : vector<8x128xbf16>, vector<128x128xbf16>, vector<8x128xf32> -> vector<8x128xf32>
    %c0_10 = arith.constant 0 : index
    %c0_11 = arith.constant 0 : index
    %15 = vector.load %arg5[%c0_10, %c0_11] : memref<1x128xf32, #tpu.memory_space<vmem>>, vector<1x128xf32>
    %16 = vector.broadcast %15 : vector<1x128xf32> to vector<8x128xf32>
    %17 = arith.addf %14, %16 : vector<8x128xf32>
    %cst_12 = arith.constant 0.000000e+00 : f32
    %18 = vector.broadcast %cst_12 : f32 to vector<8x128xf32>
    %19 = arith.cmpf ogt, %17, %18 : vector<8x128xf32>
    %cst_13 = arith.constant 0.00999999977 : f32
    %20 = vector.broadcast %cst_13 : f32 to vector<8x128xf32>
    %21 = arith.mulf %20, %17 : vector<8x128xf32>
    %22 = arith.select %19, %17, %21 : vector<8x128xi1>, vector<8x128xf32>
    %23 = arith.truncf %22 : vector<8x128xf32> to vector<8x128xbf16>
    %c0_14 = arith.constant 0 : index
    %c0_15 = arith.constant 0 : index
    %24 = vector.load %arg6[%c0_14, %c0_15] : memref<128x128xbf16, #tpu.memory_space<vmem>>, vector<128x128xbf16>
    %cst_16 = arith.constant dense<0.000000e+00> : vector<8x128xf32>
    %25 = tpu.matmul %23, %24, %cst_16 {dimension_numbers = #tpu.dot_dimension_numbers<[1], [0], [0], [1], [0, 0, 1, 1], [], []>} : vector<8x128xbf16>, vector<128x128xbf16>, vector<8x128xf32> -> vector<8x128xf32>
    %c0_17 = arith.constant 0 : index
    %c0_18 = arith.constant 0 : index
    %26 = vector.load %arg7[%c0_17, %c0_18] : memref<1x128xf32, #tpu.memory_space<vmem>>, vector<1x128xf32>
    %27 = vector.broadcast %26 : vector<1x128xf32> to vector<8x128xf32>
    %28 = arith.addf %25, %27 : vector<8x128xf32>
    %cst_19 = arith.constant 5.000000e-01 : f32
    %29 = vector.broadcast %cst_19 : f32 to vector<8x128xf32>
    %30 = arith.mulf %29, %28 : vector<8x128xf32>
    %31 = math.tanh %30 : vector<8x128xf32>
    %cst_20 = arith.constant 1.000000e+00 : f32
    %32 = vector.broadcast %cst_20 : f32 to vector<8x128xf32>
    %33 = arith.addf %31, %32 : vector<8x128xf32>
    %cst_21 = arith.constant 5.000000e-01 : f32
    %34 = vector.broadcast %cst_21 : f32 to vector<8x128xf32>
    %35 = arith.mulf %34, %33 : vector<8x128xf32>
    %36 = arith.truncf %35 : vector<8x128xf32> to vector<8x128xbf16>
    %c0_22 = arith.constant 0 : index
    %c0_23 = arith.constant 0 : index
    %37 = vector.load %arg8[%c0_22, %c0_23] : memref<128x128xbf16, #tpu.memory_space<vmem>>, vector<128x128xbf16>
    %cst_24 = arith.constant dense<0.000000e+00> : vector<8x128xf32>
    %38 = tpu.matmul %36, %37, %cst_24 {dimension_numbers = #tpu.dot_dimension_numbers<[1], [0], [0], [1], [0, 0, 1, 1], [], []>} : vector<8x128xbf16>, vector<128x128xbf16>, vector<8x128xf32> -> vector<8x128xf32>
    %c0_25 = arith.constant 0 : index
    %c0_26 = arith.constant 0 : index
    %39 = vector.load %arg9[%c0_25, %c0_26] : memref<1x128xf32, #tpu.memory_space<vmem>>, vector<1x128xf32>
    %40 = vector.broadcast %39 : vector<1x128xf32> to vector<8x128xf32>
    %41 = arith.addf %38, %40 : vector<8x128xf32>
    %42 = math.exp %41 : vector<8x128xf32>
    %cst_27 = arith.constant dense<0.000000e+00> : vector<8xf32>
    %43 = vector.multi_reduction <add>, %42, %cst_27 [1] : vector<8x128xf32> to vector<8xf32>
    %44 = vector.shape_cast %43 : vector<8xf32> to vector<8x1xf32>
    %45 = vector.broadcast %44 : vector<8x1xf32> to vector<8x128xf32>
    %46 = arith.divf %42, %45 : vector<8x128xf32>
    %c0_28 = arith.constant 0 : index
    %c0_29 = arith.constant 0 : index
    %47 = vector.load %arg10[%c0_28, %c0_29] : memref<8x128xf32, #tpu.memory_space<vmem>>, vector<8x128xf32>
    tpu.vector_store %arg10[%c0_28, %c0_29], %46 {strides = array<i32>} : memref<8x128xf32, #tpu.memory_space<vmem>>, vector<8x128xf32>,
    return
  }
  func.func @transform_0(%arg0: i32) -> (i32, i32) {
    %c0_i32 = arith.constant 0 : i32
    %c0_i32_0 = arith.constant 0 : i32
    return %arg0, %c0_i32 : i32, i32
  }
  func.func @transform_1(%arg0: i32) -> (i32, i32) {
    %c0_i32 = arith.constant 0 : i32
    %c0_i32_0 = arith.constant 0 : i32
    %c0_i32_1 = arith.constant 0 : i32
    return %c0_i32, %c0_i32_0 : i32, i32
  }
  func.func @transform_2(%arg0: i32) -> (i32, i32) {
    %c0_i32 = arith.constant 0 : i32
    %c0_i32_0 = arith.constant 0 : i32
    %c0_i32_1 = arith.constant 0 : i32
    return %c0_i32, %c0_i32_0 : i32, i32
  }
  func.func @transform_3(%arg0: i32) -> (i32, i32) {
    %c0_i32 = arith.constant 0 : i32
    %c0_i32_0 = arith.constant 0 : i32
    %c0_i32_1 = arith.constant 0 : i32
    return %c0_i32, %c0_i32_0 : i32, i32
  }
  func.func @transform_4(%arg0: i32) -> (i32, i32) {
    %c0_i32 = arith.constant 0 : i32
    %c0_i32_0 = arith.constant 0 : i32
    %c0_i32_1 = arith.constant 0 : i32
    return %c0_i32, %c0_i32_0 : i32, i32
  }
  func.func @transform_5(%arg0: i32) -> (i32, i32) {
    %c0_i32 = arith.constant 0 : i32
    %c0_i32_0 = arith.constant 0 : i32
    %c0_i32_1 = arith.constant 0 : i32
    return %c0_i32, %c0_i32_0 : i32, i32
  }
  func.func @transform_6(%arg0: i32) -> (i32, i32) {
    %c0_i32 = arith.constant 0 : i32
    %c0_i32_0 = arith.constant 0 : i32
    %c0_i32_1 = arith.constant 0 : i32
    return %c0_i32, %c0_i32_0 : i32, i32
  }
  func.func @transform_7(%arg0: i32) -> (i32, i32) {
    %c0_i32 = arith.constant 0 : i32
    %c0_i32_0 = arith.constant 0 : i32
    %c0_i32_1 = arith.constant 0 : i32
    return %c0_i32, %c0_i32_0 : i32, i32
  }
  func.func @transform_8(%arg0: i32) -> (i32, i32) {
    %c0_i32 = arith.constant 0 : i32
    %c0_i32_0 = arith.constant 0 : i32
    %c0_i32_1 = arith.constant 0 : i32
    return %c0_i32, %c0_i32_0 : i32, i32
  }
  func.func @transform_9(%arg0: i32) -> (i32, i32) {
    %c0_i32 = arith.constant 0 : i32
    %c0_i32_0 = arith.constant 0 : i32
    return %arg0, %c0_i32 : i32, i32
  }
}

</mosaic_0001>

<bundles_post_ra>
// kernel: tpu_custom_call.1
= control target key start
LH: loop header
LB: loop body
LE: loop exit
PB: predicated region body
PF: predicated region fallthrough
CT: control target
= control target key end

     0   :  { %14 = vsyncpa [#allocation3], 0  ;;  %s967_s0 = inlined_call_operand.hbm [shape: bf16[8,14], index: 0, kind: input, shape index: {}]   ;;  %s968_s1 = inlined_call_operand.hbm [shape: bf16[14,128], index: 1, kind: input, shape index: {}]   ;;  %s969_s2 = inlined_call_operand.vmem [shape: f32[1,128], index: 2, kind: input, shape index: {}]   ;;  %s970_s3 = inlined_call_operand.hbm [shape: bf16[128,128], index: 3, kind: input, shape index: {}]   ;;  %s971_s4 = inlined_call_operand.vmem [shape: f32[1,128], index: 4, kind: input, shape index: {}]   ;;  %s972_s5 = inlined_call_operand.hbm [shape: bf16[128,128], index: 5, kind: input, shape index: {}]   ;;  %s973_s6 = inlined_call_operand.vmem [shape: f32[1,128], index: 6, kind: input, shape index: {}]   ;;  %s974_s7 = inlined_call_operand.hbm [shape: bf16[128,128], index: 7, kind: input, shape index: {}]   ;;  %s975_s8 = inlined_call_operand.vmem [shape: f32[1,128], index: 8, kind: input, shape index: {}]   ;;  %s976_s9 = inlined_call_operand.hbm [shape: f32[8,128], index: 9, kind: output, shape index: {}]  }
   0x1   :  { %15 = vsyncpa [#allocation6], 0 }
   0x2   :  { %16 = vsyncpa [#allocation9], 0 }
   0x3   :  { %17 = vsyncpa [#allocation4], 0  ;;  %s832_s30 = smov [#allocation5]  }
   0x4   :  { %s33_s10 = sshll.u32 %s832_s30, 4  ;;  %s34_s10 = int_to_ptr.vmem [resolvable:$true] %s33_s10 }
   0x5   :  { %s712_s11 = scalar_lea.vmem %s34_s10, 128  ;;  %p717_p1 = scmp.lt.s32.totalorder %s34_s10, %s34_s10 }
   0x6   :  { %p713_p0 = scmp.ne.s32.totalorder %s34_s10, %s712_s11  ;;  %p718_p2 = scmp.lt.s32.totalorder %s712_s11, %s712_s11 }
   0x8   :  { %p719_p3 = por %p718_p2, %p717_p1 }
   0xa   :  { %p720_p4 = pnand %p719_p3, %p713_p0 }
   0xc   :  { %723 = shalt.err (!%p720_p4)
}
   0xd   :  { %s833_s12 = smov 64   ;;  %s834_s13 = smov 4  }
   0xe   :  { %39 = dma.hbm_to_vmem [thread:$0]  %s968_s1, 128, %s34_s10, [#allocation6], %s833_s12, %s833_s12, %s834_s13  }
   0xf   :  { %s835_s16 = smov [#allocation8]   ;;  %s836_s18 = smov [#allocation2]  }
  0x10   :  { %s61_s17 = sshll.u32 %s835_s16, 4  ;;  %s24_s19 = sshll.u32 %s836_s18, 4  ;;  %s62_s17 = int_to_ptr.vmem [resolvable:$true] %s61_s17  ;;  %s25_s19 = int_to_ptr.vmem [resolvable:$true] %s24_s19 }
  0x11   :  { %s732_s20 = scalar_lea.vmem %s62_s17, 1024  ;;  %p737_p6 = scmp.lt.s32.totalorder %s62_s17, %s62_s17 }
  0x12   :  { %p733_p5 = scmp.ne.s32.totalorder %s62_s17, %s732_s20  ;;  %p738_p7 = scmp.lt.s32.totalorder %s732_s20, %s732_s20 }
  0x14   :  { %p739_p8 = por %p738_p7, %p737_p6 }
  0x16   :  { %p740_p9 = pnand %p739_p8, %p733_p5 }
  0x18   :  { %743 = shalt.err (!%p740_p9)
}
  0x19   :  { %67 = dma.hbm_to_vmem [thread:$0]  %s972_s5, 1024, %s62_s17, [#allocation9], %s833_s12, %s833_s12, %s834_s13  }
  0x1a   :  { %s752_s1 = scalar_lea.vmem %s25_s19, 64  ;;  %p757_p11 = scmp.lt.s32.totalorder %s25_s19, %s25_s19 }
  0x1b   :  { %p753_p10 = scmp.ne.s32.totalorder %s25_s19, %s752_s1  ;;  %p758_p12 = scmp.lt.s32.totalorder %s752_s1, %s752_s1 }
  0x1d   :  { %p759_p13 = por %p758_p12, %p757_p11 }
  0x1f   :  { %p760_p0 = pnand %p759_p13, %p753_p10 }
  0x21   :  { %763 = shalt.err (!%p760_p0)
}
  0x22   :  { %27 = dma.hbm_to_vmem [thread:$0]  %s967_s0, 64, %s25_s19, [#allocation3]  }
  0x23   :  { %s837_s25 = smov [#allocation7]   ;;  %s838_s27 = smov [#allocation10]  }
  0x24   :  { %s47_s26 = sshll.u32 %s837_s25, 4  ;;  %s75_s28 = sshll.u32 %s838_s27, 4  ;;  %s48_s26 = int_to_ptr.vmem [resolvable:$true] %s47_s26  ;;  %s76_s28 = int_to_ptr.vmem [resolvable:$true] %s75_s28 }
  0x25   :  { %s772_s29 = scalar_lea.vmem %s48_s26, 1024  ;;  %p777_p2 = scmp.lt.s32.totalorder %s48_s26, %s48_s26 }
  0x26   :  { %p773_p1 = scmp.ne.s32.totalorder %s48_s26, %s772_s29  ;;  %p778_p3 = scmp.lt.s32.totalorder %s772_s29, %s772_s29 }
  0x28   :  { %p779_p4 = por %p778_p3, %p777_p2 }
  0x2a   :  { %p780_p5 = pnand %p779_p4, %p773_p1 }
  0x2c   :  { %783 = shalt.err (!%p780_p5)
}
  0x2d   :  { %53 = dma.hbm_to_vmem [thread:$0]  %s970_s3, 1024, %s48_s26, [#allocation6], %s833_s12, %s833_s12, %s834_s13  }
  0x2e   :  { %s792_s0 = scalar_lea.vmem %s76_s28, 1024  ;;  %p797_p7 = scmp.lt.s32.totalorder %s76_s28, %s76_s28 }
  0x2f   :  { %p793_p6 = scmp.ne.s32.totalorder %s76_s28, %s792_s0  ;;  %p798_p8 = scmp.lt.s32.totalorder %s792_s0, %s792_s0 }
  0x31   :  { %p799_p9 = por %p798_p8, %p797_p7 }
  0x33   :  { %p800_p10 = pnand %p799_p9, %p793_p6 }
  0x35   :  { %803 = shalt.err (!%p800_p10)
}
  0x36   :  { %81 = dma.hbm_to_vmem [thread:$0]  %s974_s7, 1024, %s76_s28, [#allocation9], %s833_s12, %s833_s12, %s834_s13  }
  0x37   :  { %824 = dma.done.wait [#allocation3], 64  }
  0x38   :  { %825 = vsyncadd [#allocation3], 4294967232 }
  0x39   :  { %826 = dma.done.wait [#allocation6], 1152  }
  0x3a   :  { %827 = vsyncadd [#allocation6], 4294966144 }
  0x3b   :  { %828 = dma.done.wait [#allocation9], 2048  }
  0x3c   :  { %829 = vsyncadd [#allocation9], 4294965248  ;;  %v839_v0 = vmov 0.0   ;;  %vm840_vm0 = vmmov 0   ;;  %vm119_vm1 = vcmask 1046528   ;;  %v672_v3 = vld [vmem:[#allocation7 + $0x38] sm:$0xff]  }
  0x3d   :  { %595 = vmatprep.subr.bf16.mxu0 %v839_v0  ;;  %597 = vmatprep.mubr.msk.bf16.mxu0 %vm840_vm0, %v839_v0  ;;  %v671_v1 = vld [vmem:[#allocation5] sm:$0x7f]   ;;  %v100_v4 = vld [vmem:[#allocation2] sm:$0xf]  ;;  %vm115_vm2 = vcmask 113664   ;;  %v674_v6 = vld [vmem:[#allocation7 + $0x28] sm:$0xff]  }
  0x3e   :  { %601 = vmatprep.subr.bf16.mxu1 %v839_v0  ;;  %617 = vmatprep.mubr.msk.bf16.mxu1 %vm840_vm0, %v839_v0  ;;  %v121_v2 = vsel %vm119_vm1, %v671_v1, 0  ;;  %v673_v5 = vld [vmem:[#allocation7 + $0x30] sm:$0xff]   ;;  %v675_v7 = vld [vmem:[#allocation7 + $0x20] sm:$0xff]   ;;  %v676_v8 = vld [vmem:[#allocation7 + $0x18] sm:$0xff]  }
  0x3f   :  { %596 = vmatpush3.bf16.msra.mxu0 %v121_v2  ;;  %602 = vmatpush3.bf16.msra.mxu1 %v672_v3  ;;  %v677_v9 = vld [vmem:[#allocation7 + $0x10] sm:$0xff]   ;;  %v678_v10 = vld [vmem:[#allocation7 + $0x8] sm:$0xff]   ;;  %v679_v11 = vld [vmem:[#allocation7] sm:$0xff]  }
  0x40   :  { %621 = vmatprep.subr.bf16.mxu0 %v839_v0  ;;  %603 = vmatprep.subr.bf16.mxu1 %v839_v0  ;;  %v680_v12 = vld [vmem:[#allocation8 + $0x38] sm:$0xff]   ;;  %v681_v13 = vld [vmem:[#allocation8 + $0x30] sm:$0xff]   ;;  %v682_v14 = vld [vmem:[#allocation8 + $0x28] sm:$0xff]  }
  0x41   :  { %v683_v15 = vld [vmem:[#allocation8 + $0x20] sm:$0xff]   ;;  %v684_v16 = vld [vmem:[#allocation8 + $0x18] sm:$0xff]   ;;  %v685_v17 = vld [vmem:[#allocation8 + $0x10] sm:$0xff]  }
  0x42   :  { %598 = vmatmul.mubr.msk.bf16.vlgmr.msra.gmra.mxu0 %vm115_vm2, %v100_v4  ;;  %v535_v18 = vld [vmem:[%s969_s2] ss:$0 sm:$0xff]  ;;  %v686_v29 = vld [vmem:[#allocation8 + $0x8] sm:$0xff]   ;;  %v687_v30 = vld [vmem:[#allocation8] sm:$0xff]  }
  0x43   :  { %637 = vmatprep.mubr.msk.bf16.mxu0 %vm840_vm0, %v839_v0  ;;  %604 = vmatpush3.bf16.msra.mxu1 %v673_v5  ;;  %v688_v31 = vld [vmem:[#allocation10 + $0x38] sm:$0xff]   ;;  %v689_v32 = vld [vmem:[#allocation10 + $0x30] sm:$0xff]   ;;  %v690_v42 = vld [vmem:[#allocation10 + $0x28] sm:$0xff]  }
  0x44   :  { %605 = vmatprep.subr.bf16.mxu1 %v839_v0  ;;  %622 = vmatpush3.bf16.msra.mxu0 %v680_v12  ;;  %v539_v33 = vld [vmem:[%s971_s4] ss:$0 sm:$0xff]  ;;  %v691_v43 = vld [vmem:[#allocation10 + $0x20] sm:$0xff]   ;;  %v692_v44 = vld [vmem:[#allocation10 + $0x18] sm:$0xff]  }
  0x45   :  { %623 = vmatprep.subr.bf16.mxu0 %v839_v0  ;;  %v693_v45 = vld [vmem:[#allocation10 + $0x10] sm:$0xff]   ;;  %v694_v46 = vld [vmem:[#allocation10 + $0x8] sm:$0xff]   ;;  %v695_v47 = vld [vmem:[#allocation10] sm:$0xff]  }
  0x46   :  { %v548_v48 = vld [vmem:[%s973_s6] ss:$0 sm:$0xff]  ;;  %s841_s6 = smov [#allocation11]  }
  0x47   :  { %606 = vmatpush3.bf16.msra.mxu1 %v674_v6  ;;  %v557_v59 = vld [vmem:[%s975_s8] ss:$0 sm:$0xff]  ;;  %s524_s16 = sshll.u32 %s841_s6, 4  ;;  %s525_s16 = int_to_ptr.vmem [resolvable:$true] %s524_s16 }
  0x48   :  { %607 = vmatprep.subr.bf16.mxu1 %v839_v0  ;;  %624 = vmatpush3.bf16.msra.mxu0 %v681_v13  ;;  %s804_s17 = scalar_lea.vmem %s525_s16, 128  ;;  %p809_p12 = scmp.lt.s32.totalorder %s525_s16, %s525_s16 }
  0x49   :  { %625 = vmatprep.subr.bf16.mxu0 %v839_v0  ;;  %p805_p11 = scmp.ne.s32.totalorder %s525_s16, %s804_s17  ;;  %p810_p13 = scmp.lt.s32.totalorder %s804_s17, %s804_s17 }
  0x4b   :  { %608 = vmatpush3.bf16.msra.mxu1 %v675_v7  ;;  %p811_p0 = por %p810_p13, %p809_p12 }
  0x4c   :  { %609 = vmatprep.subr.bf16.mxu1 %v839_v0  ;;  %626 = vmatpush3.bf16.msra.mxu0 %v682_v14 }
  0x4d   :  { %627 = vmatprep.subr.bf16.mxu0 %v839_v0  ;;  %p812_p1 = pnand %p811_p0, %p805_p11 }
  0x4f   :  { %610 = vmatpush3.bf16.msra.mxu1 %v676_v8 }
  0x50   :  { %611 = vmatprep.subr.bf16.mxu1 %v839_v0  ;;  %628 = vmatpush3.bf16.msra.mxu0 %v683_v15 }
  0x51   :  { %629 = vmatprep.subr.bf16.mxu0 %v839_v0 }
  0x53   :  { %612 = vmatpush3.bf16.msra.mxu1 %v677_v9 }
  0x54   :  { %613 = vmatprep.subr.bf16.mxu1 %v839_v0  ;;  %630 = vmatpush3.bf16.msra.mxu0 %v684_v16 }
  0x55   :  { %631 = vmatprep.subr.bf16.mxu0 %v839_v0 }
  0x57   :  { %614 = vmatpush3.bf16.msra.mxu1 %v678_v10 }
  0x58   :  { %615 = vmatprep.subr.bf16.mxu1 %v839_v0  ;;  %632 = vmatpush3.bf16.msra.mxu0 %v685_v17 }
  0x59   :  { %633 = vmatprep.subr.bf16.mxu0 %v839_v0 }
  0x5b   :  { %616 = vmatpush3.bf16.msra.mxu1 %v679_v11 }
  0x5c   :  { %641 = vmatprep.subr.bf16.mxu1 %v839_v0  ;;  %634 = vmatpush3.bf16.msra.mxu0 %v686_v29 }
  0x5d   :  { %635 = vmatprep.subr.bf16.mxu0 %v839_v0 }
  0x60   :  { %636 = vmatpush3.bf16.msra.mxu0 %v687_v30 }
 0x102   :  { %v157_v19 = vpop.f32.mrf.mxu0 }
 0x103   :  { %v158_v20 = vadd.f32 %v535_v18, %v157_v19 }
 0x104   :  { %v599_v21 = vpop.f32.mrf.mxu0 }
 0x105   :  { %v164_v22 = vmul.f32 1.442695, %v158_v20  ;;  %vm163_vm3 = vcmp.gt.f32.partialorder %v158_v20, 0.0 }
 0x106   :  { %v160_v23 = vpop.f32.mrf.mxu0 }
 0x107   :  { %696 = vpow2.f32 %v164_v22 }
 0x108   :  { %v600_v24 = vpop.f32.mrf.mxu0 }
 0x114   :  { %v697_v25 = vpop.eup %696 }
 0x115   :  { %v538_v26 = vadd.f32 -1.0, %v697_v25 }
 0x117   :  { %v167_v27 = vsel %vm163_vm3, %v158_v20, %v538_v26 }
 0x118   :  { %v168_v28 = vpack.c.bf16 %v167_v27, %v167_v27 }
 0x11a   :  { %618 = vmatmul.mubr.bf16.vlgmr.msra.gmra.mxu1 %v168_v28 }
 0x11b   :  { %657 = vmatprep.mubr.msk.bf16.mxu1 %vm840_vm0, %v839_v0  ;;  %642 = vmatpush3.bf16.msra.mxu1 %v688_v31 }
 0x11c   :  { %643 = vmatprep.subr.bf16.mxu1 %v839_v0 }
 0x11f   :  { %644 = vmatpush3.bf16.msra.mxu1 %v689_v32 }
 0x120   :  { %645 = vmatprep.subr.bf16.mxu1 %v839_v0 }
 0x123   :  { %646 = vmatpush3.bf16.msra.mxu1 %v690_v42 }
 0x124   :  { %647 = vmatprep.subr.bf16.mxu1 %v839_v0 }
 0x127   :  { %648 = vmatpush3.bf16.msra.mxu1 %v691_v43 }
 0x128   :  { %649 = vmatprep.subr.bf16.mxu1 %v839_v0 }
 0x12b   :  { %650 = vmatpush3.bf16.msra.mxu1 %v692_v44 }
 0x12c   :  { %651 = vmatprep.subr.bf16.mxu1 %v839_v0 }
 0x12f   :  { %652 = vmatpush3.bf16.msra.mxu1 %v693_v45 }
 0x130   :  { %653 = vmatprep.subr.bf16.mxu1 %v839_v0 }
 0x133   :  { %654 = vmatpush3.bf16.msra.mxu1 %v694_v46 }
 0x134   :  { %655 = vmatprep.subr.bf16.mxu1 %v839_v0 }
 0x137   :  { %656 = vmatpush3.bf16.msra.mxu1 %v695_v47 }
 0x1da   :  { %v274_v34 = vpop.f32.mrf.mxu1 }
 0x1db   :  { %v275_v35 = vadd.f32 %v539_v33, %v274_v34 }
 0x1dc   :  { %v619_v36 = vpop.f32.mrf.mxu1 }
 0x1dd   :  { %vm280_vm4 = vcmp.gt.f32.partialorder %v275_v35, 0.0  ;;  %v281_v37 = vmul.f32 0.01, %v275_v35 }
 0x1de   :  { %v277_v38 = vpop.f32.mrf.mxu1 }
 0x1df   :  { %v282_v39 = vsel %vm280_vm4, %v275_v35, %v281_v37 }
 0x1e0   :  { %v283_v40 = vpack.c.bf16 %v282_v39, %v282_v39  ;;  %v620_v41 = vpop.f32.mrf.mxu1 }
 0x1e2   :  { %638 = vmatmul.mubr.bf16.vlgmr.msra.gmra.mxu0 %v283_v40 }
 0x2a2   :  { %v389_v49 = vpop.f32.mrf.mxu0 }
 0x2a3   :  { %v390_v50 = vadd.f32 %v548_v48, %v389_v49 }
 0x2a4   :  { %v639_v51 = vpop.f32.mrf.mxu0 }
 0x2a5   :  { %v395_v52 = vmul.f32 0.5, %v390_v50 }
 0x2a6   :  { %v392_v53 = vpop.f32.mrf.mxu0 }
 0x2a7   :  { %698 = vtanh.f32 %v395_v52 }
 0x2a8   :  { %v640_v54 = vpop.f32.mrf.mxu0 }
 0x2b4   :  { %v699_v55 = vpop.eup %698 }
 0x2b5   :  { %v397_v56 = vadd.f32 1.0, %v699_v55 }
 0x2b7   :  { %v398_v57 = vmul.f32 0.5, %v397_v56 }
 0x2b9   :  { %v399_v58 = vpack.c.bf16 %v398_v57, %v398_v57 }
 0x2bb   :  { %658 = vmatmul.mubr.bf16.vlgmr.msra.gmra.mxu1 %v399_v58 }
 0x37b   :  { %v505_v60 = vpop.f32.mrf.mxu1 }
 0x37c   :  { %v506_v61 = vadd.f32 %v557_v59, %v505_v60 }
 0x37d   :  { %v659_v62 = vpop.f32.mrf.mxu1 }
 0x37e   :  { %v511_v63 = vmul.f32 1.442695, %v506_v61 }
 0x37f   :  { %v508_v0 = vpop.f32.mrf.mxu1 }
 0x380   :  { %700 = vpow2.f32 %v511_v63 }
 0x381   :  { %v660_v1 = vpop.f32.mrf.mxu1 }
 0x38d   :  { %v701_v2 = vpop.eup %700 }
 0x38e   :  { %513 = vadd.xlane.f32.xlu0 %v701_v2 }
 0x417   :  { %v514_v3 = vpop.xlane.xlu0 %513 }
 0x418   :  { %702 = vrcp.f32 %v514_v3 }
 0x425   :  { %v703_v4 = vpop.eup %702 }
 0x426   :  { %v516_v5 = vmul.f32 %v703_v4, %v701_v2 }
 0x428   :  { %517 = vst [vmem:[#allocation11] sm:$0xff] %v516_v5 }
 0x429   :  { %815 = shalt.err (!%p812_p1)
}
 0x42a   :  { %527 = dma.vmem_to_hbm [thread:$0]  %s525_s16, 128, %s976_s9, [#allocation4]  }
 0x42b   :  { %830 = dma.done.wait [#allocation4], 128  }
 0x42c   :  { %831 = vsyncadd [#allocation4], 4294967168 }
 0x42d   :  { %531 = vsyncpa [#allocation3], 1 }
 0x42e   :  { %532 = vsyncpa [#allocation6], 1 }
 0x42f   :  { %533 = vsyncpa [#allocation9], 1 }
 0x430   :  { %534 = vsyncpa [#allocation4], 1 }

</bundles_post_ra>
